<compile_context>
chip_gen: v5e
topology: v5e:2x2
jax: 0.10.0
libtpu: 0.0.40
codegen_flags: <defaults>
</compile_context>

<pallas_src>
import functools
import math

import jax
import jax.numpy as jnp
import numpy as np
from jax.experimental import pallas as pl
from jax.experimental.pallas import tpu as pltpu


def _round_up(x, m):
    return (x + m - 1) // m * m


def _textcnn_kernel(
    unf_ref,     # (TB, T_pad, KD)  unfolded (im2col) embeddings, param_dtype
    wf_ref,      # (KD, KP)         fused conv weight (taps folded), resident
    bf_ref,      # (1, KP) f32      fused conv bias
    lval_ref,    # (1, KP) int32    per-lane valid conv-output length
    fcw_ref,     # (KP, CP)         fc weight (padded), resident
    fcb_ref,     # (1, CP) f32      fc bias (padded)
    out_ref,     # (TB, CP) f32     output block
    *, TB, T_pad, C):
    KD = unf_ref.shape[2]
    KP = wf_ref.shape[1]
    CP = fcw_ref.shape[1]

    # All three conv branches + all taps in ONE deep MXU contraction:
    # (TB*T_pad, KD) @ (KD, KP) with f32 accumulation.
    x = unf_ref[...].reshape(TB * T_pad, KD)
    acc = jnp.dot(x, wf_ref[...], preferred_element_type=jnp.float32)
    acc = jnp.maximum(acc + bf_ref[...], 0.0)            # bias + ReLU
    acc = acc.reshape(TB, T_pad, KP)

    # Per-branch time validity (partial windows / padded time / padded lanes
    # are zeroed, which is neutral for the max-pool since ReLU output >= 0).
    t_idx = jax.lax.broadcasted_iota(jnp.int32, (TB, T_pad, KP), 1)
    acc = jnp.where(t_idx < lval_ref[...], acc, 0.0)
    pooled = jnp.max(acc, axis=1)                         # (TB, KP) max over time

    # TODO(synk): dropout is a no-op in eval mode; train-mode RNG dropout is
    # not implemented in-kernel.
    logits = jnp.dot(pooled.astype(fcw_ref.dtype), fcw_ref[...],
                     preferred_element_type=jnp.float32) + fcb_ref[...]  # (TB, CP)

    # log_softmax over the real C classes only (padded lanes masked out).
    lane_c = jax.lax.broadcasted_iota(jnp.int32, (TB, CP), 1)
    valid_c = lane_c < C
    m = jnp.max(jnp.where(valid_c, logits, -jnp.inf), axis=1, keepdims=True)
    p = jnp.where(valid_c, jnp.exp(logits - m), 0.0)
    lse = jnp.log(jnp.sum(p, axis=1, keepdims=True)) + m
    out_ref[...] = (logits - lse).astype(out_ref.dtype)


def textcnn_forward(tokens, params, *, kernel_sizes,
                    param_dtype=jnp.bfloat16, block_b=None):
    """tokens: (B, S) int32. Returns (B, class_num) f32 log-probs."""
    B, S = tokens.shape
    embed = params["embed"].astype(param_dtype)
    V, D = embed.shape
    K = params["w1"].shape[2]              # kernel_num
    C = params["fc_b"].shape[-1]           # class_num
    n_branch = len(kernel_sizes)
    ks_max = max(kernel_sizes)
    ks_min = min(kernel_sizes)
    if S < ks_max:
        raise ValueError("sequence length must be >= max kernel size "
                         "(PyTorch Conv2d would error as well)")

    # Padded tile geometry: sublanes multiple of 8, lanes multiple of 128.
    T_pad = _round_up(S - ks_min + 1, 8)           # conv-output time steps
    KD = ks_max * D                                # folded contraction depth
    KP = _round_up(n_branch * K, 128)              # fused conv output lanes
    CP = _round_up(C, 128)                         # padded class lanes

    # Batch blocking: TB multiple of 8; keep >=2 grid steps when possible so
    # v7x megacore ("parallel") has work for both TensorCores.
    if block_b is None:
        b8 = _round_up(B, 8)
        block_b = 32 if b8 >= 64 else (16 if b8 >= 32 else 8)
    TB = _round_up(block_b, 8)
    B_pad = _round_up(B, TB)
    n_blocks = B_pad // TB

    # ---- XLA-side preprocessing (hidden by BlockSpec pipelining) -----------
    # Embedding gather (== nn.Embedding forward); padded batch rows use the
    # padding token id 1.
    tok_p = jnp.pad(tokens.astype(jnp.int32), ((0, B_pad - B), (0, 0)),
                    constant_values=1)
    emb = jnp.take(embed, tok_p, axis=0)                      # (B_pad, S, D)
    # Zero-pad time so every tap of every (possibly masked) t < T_pad stays
    # inside one batch element.
    S_need = T_pad + ks_max - 1
    emb = jnp.pad(emb, ((0, 0), (0, max(0, S_need - S)), (0, 0)))
    # im2col unfold: unf[b, t, k*D + d] = emb[b, t + k, d].
    unf = jnp.concatenate([emb[:, k:k + T_pad, :] for k in range(ks_max)],
                          axis=-1)                            # (B_pad, T_pad, KD)

    # Fold the branch conv weights into one lane-dense (KD, KP) matrix; taps a
    # branch does not have (and padded lanes) are zero.  Per-lane valid conv
    # output length goes into lval (0 on padded lanes -> always masked).
    wf = jnp.zeros((KD, KP), param_dtype)
    bf = jnp.zeros((1, KP), jnp.float32)
    lval = jnp.zeros((1, KP), jnp.int32)
    for j, ks in enumerate(kernel_sizes):
        w = params[f"w{j + 1}"].astype(param_dtype)           # (ks, D, K)
        wf = wf.at[:ks * D, j * K:(j + 1) * K].set(w.reshape(ks * D, K))
        bf = bf.at[:, j * K:(j + 1) * K].set(params[f"b{j + 1}"])
        lval = lval.at[:, j * K:(j + 1) * K].set(S - ks + 1)
    fcw = jnp.zeros((KP, CP), param_dtype).at[:n_branch * K, :C].set(
        params["fc_w"].astype(param_dtype))
    fcb = jnp.zeros((1, CP), jnp.float32).at[:, :C].set(params["fc_b"])

    kern = functools.partial(_textcnn_kernel, TB=TB, T_pad=T_pad, C=C)

    grid_spec = pltpu.PrefetchScalarGridSpec(
        num_scalar_prefetch=0,
        grid=(n_blocks,),
        in_specs=[
            pl.BlockSpec((TB, T_pad, KD), lambda i: (i, 0, 0)),  # unfolded act.
            pl.BlockSpec((KD, KP), lambda i: (0, 0)),            # resident
            pl.BlockSpec((1, KP), lambda i: (0, 0)),             # resident
            pl.BlockSpec((1, KP), lambda i: (0, 0)),             # resident
            pl.BlockSpec((KP, CP), lambda i: (0, 0)),            # resident
            pl.BlockSpec((1, CP), lambda i: (0, 0)),             # resident
        ],
        out_specs=pl.BlockSpec((TB, CP), lambda i: (i, 0)),
    )

    itemsize = jnp.dtype(param_dtype).itemsize
    cost = pl.CostEstimate(
        flops=int(2 * B_pad * T_pad * KD * KP + 2 * B_pad * KP * CP),
        transcendentals=int(B_pad * (CP + 1)),
        bytes_accessed=int(B_pad * T_pad * KD * itemsize + B_pad * CP * 4
                           + (KD * KP + KP * CP) * itemsize
                           + (2 * KP + CP) * 4),
    )

    out_padded = pl.pallas_call(
        kern,
        out_shape=jax.ShapeDtypeStruct((B_pad, CP), jnp.float32),
        grid_spec=grid_spec,
        compiler_params=pltpu.CompilerParams(
            dimension_semantics=("parallel",),
            # Per-step working set (double-buffered (TB,T_pad,KD) block +
            # resident fused weights) is tiny; 32 MiB fits every generation,
            # including v7x's 64 MiB physical VMEM.
            vmem_limit_bytes=32 * 1024 * 1024,
        ),
        cost_estimate=cost,
    )(unf, wf, bf, lval, fcw, fcb)

    return out_padded[:B, :C]


def make_params(key, vocab_size, embed_dim, kernel_num, kernel_sizes, class_num):
    ks = jax.random.split(key, 8)
    embed = jax.random.normal(ks[0], (vocab_size, embed_dim), jnp.float32)
    embed = embed.at[1].set(0.0)   # padding_idx=1

    def conv_w(k, ksz):
        n = ksz * embed_dim * kernel_num
        std = math.sqrt(2.0 / n)   # mimic init_weight()
        # stored as (ksz, embed_dim, kernel_num): tap k is a (D, K) matmul weight
        return std * jax.random.normal(k, (ksz, embed_dim, kernel_num), jnp.float32)

    params = {
        "embed": embed,
        "w1": conv_w(ks[1], kernel_sizes[0]),
        "b1": jnp.zeros((1, kernel_num), jnp.float32),
        "w2": conv_w(ks[2], kernel_sizes[1]),
        "b2": jnp.zeros((1, kernel_num), jnp.float32),
        "w3": conv_w(ks[3], kernel_sizes[2]),
        "b3": jnp.zeros((1, kernel_num), jnp.float32),
        "fc_w": 0.01 * jax.random.normal(
            ks[4], (len(kernel_sizes) * kernel_num, class_num), jnp.float32),
        "fc_b": jnp.zeros((1, class_num), jnp.float32),
    }
    return params


def reference_forward(tokens, params, *, kernel_sizes):
    """Pure-JAX reference mirroring the PyTorch module (eval mode)."""
    emb = params["embed"][tokens]          # (B, S, D)
    B, S, D = emb.shape
    pools = []
    for w, b in [(params["w1"], params["b1"]),
                 (params["w2"], params["b2"]),
                 (params["w3"], params["b3"])]:
        ksz = w.shape[0]
        lout = S - ksz + 1
        acc = jnp.zeros((B, lout, w.shape[2]), jnp.float32)
        for k in range(ksz):
            acc = acc + jnp.einsum("btd,dk->btk", emb[:, k:k + lout, :], w[k])
        acc = jax.nn.relu(acc + b[None])
        pools.append(jnp.max(acc, axis=1))
    feats = jnp.concatenate(pools, axis=1)
    logits = feats @ params["fc_w"] + params["fc_b"]
    return jax.nn.log_softmax(logits, axis=1)


if __name__ == "__main__":
    # Small, module-consistent config.
    B, S = 2, 16
    vocab_size, embed_dim = 64, 32
    kernel_num = 8
    kernel_sizes = (3, 4, 5)
    class_num = 4

    key = jax.random.PRNGKey(0)
    k_tok, k_par = jax.random.split(key)
    tokens = jax.random.randint(k_tok, (B, S), 0, vocab_size, dtype=jnp.int32)
    params = make_params(k_par, vocab_size, embed_dim, kernel_num,
                         kernel_sizes, class_num)

    ref = reference_forward(tokens, params, kernel_sizes=kernel_sizes)

    # f32 run for the tight numerical check.
    out_f32 = textcnn_forward(tokens, params, kernel_sizes=kernel_sizes,
                              param_dtype=jnp.float32)
    out_f32 = jax.block_until_ready(out_f32)
    np.testing.assert_allclose(np.asarray(out_f32), np.asarray(ref),
                               rtol=1e-4, atol=1e-4)

    # Default bf16 parameter path (halved DMA bytes / VMEM, native MXU rate);
    # f32 accumulation, so only a loose tolerance is expected.
    out_bf16 = textcnn_forward(tokens, params, kernel_sizes=kernel_sizes)
    out_bf16 = jax.block_until_ready(out_bf16)
    np.testing.assert_allclose(np.asarray(out_bf16), np.asarray(ref),
                               rtol=5e-2, atol=5e-2)

    print("KERNEL_OK")
</pallas_src>

<mosaic_0001>
module attributes {stable_mosaic.version = 11 : i64} {
  func.func @_textcnn_kernel(%arg0: i32, %arg1: memref<8x16x160xf32, #tpu.memory_space<vmem>>, %arg2: memref<160x128xf32, #tpu.memory_space<vmem>>, %arg3: memref<1x128xf32, #tpu.memory_space<vmem>>, %arg4: memref<1x128xi32, #tpu.memory_space<vmem>>, %arg5: memref<128x128xf32, #tpu.memory_space<vmem>>, %arg6: memref<1x128xf32, #tpu.memory_space<vmem>>, %arg7: memref<8x128xf32, #tpu.memory_space<vmem>>) attributes {dimension_semantics = [#tpu.dimension_semantics<parallel>], iteration_bounds = array<i64: 1>, scalar_prefetch = 0 : i64, scratch_operands = 0 : i64, tpu.core_type = #tpu.core_type<tc>, window_params = [{transform_indices = @transform_0, window_bounds = array<i64: 8, 16, 160>}, {pipeline_mode = #tpu.pipeline_mode<synchronous>, transform_indices = @transform_1, window_bounds = array<i64: 160, 128>}, {pipeline_mode = #tpu.pipeline_mode<synchronous>, transform_indices = @transform_2, window_bounds = array<i64: 1, 128>}, {pipeline_mode = #tpu.pipeline_mode<synchronous>, transform_indices = @transform_3, window_bounds = array<i64: 1, 128>}, {pipeline_mode = #tpu.pipeline_mode<synchronous>, transform_indices = @transform_4, window_bounds = array<i64: 128, 128>}, {pipeline_mode = #tpu.pipeline_mode<synchronous>, transform_indices = @transform_5, window_bounds = array<i64: 1, 128>}, {transform_indices = @transform_6, window_bounds = array<i64: 8, 128>}]} {
    %c0 = arith.constant 0 : index
    %c0_0 = arith.constant 0 : index
    %c0_1 = arith.constant 0 : index
    %0 = vector.load %arg1[%c0, %c0_0, %c0_1] : memref<8x16x160xf32, #tpu.memory_space<vmem>>, vector<8x16x160xf32>
    %1 = vector.shape_cast %0 : vector<8x16x160xf32> to vector<128x160xf32>
    %c0_2 = arith.constant 0 : index
    %c0_3 = arith.constant 0 : index
    %2 = vector.load %arg2[%c0_2, %c0_3] : memref<160x128xf32, #tpu.memory_space<vmem>>, vector<160x128xf32>
    %cst = arith.constant dense<0.000000e+00> : vector<128x128xf32>
    %3 = tpu.matmul %1, %2, %cst {dimension_numbers = #tpu.dot_dimension_numbers<[1], [0], [0], [1], [0, 0, 1, 1], [], []>} : vector<128x160xf32>, vector<160x128xf32>, vector<128x128xf32> -> vector<128x128xf32>
    %c0_4 = arith.constant 0 : index
    %c0_5 = arith.constant 0 : index
    %4 = vector.load %arg3[%c0_4, %c0_5] : memref<1x128xf32, #tpu.memory_space<vmem>>, vector<1x128xf32>
    %5 = vector.broadcast %4 : vector<1x128xf32> to vector<128x128xf32>
    %6 = arith.addf %3, %5 : vector<128x128xf32>
    %cst_6 = arith.constant 0.000000e+00 : f32
    %7 = vector.broadcast %cst_6 : f32 to vector<128x128xf32>
    %8 = arith.maximumf %6, %7 : vector<128x128xf32>
    %9 = vector.shape_cast %8 : vector<128x128xf32> to vector<8x16x128xf32>
    %10 = tpu.iota {dimensions = array<i32: 1>} : vector<8x16x128xi32>
    %c0_7 = arith.constant 0 : index
    %c0_8 = arith.constant 0 : index
    %11 = vector.load %arg4[%c0_7, %c0_8] : memref<1x128xi32, #tpu.memory_space<vmem>>, vector<1x128xi32>
    %12 = vector.shape_cast %11 : vector<1x128xi32> to vector<1x1x128xi32>
    %13 = vector.broadcast %12 : vector<1x1x128xi32> to vector<8x16x128xi32>
    %14 = arith.cmpi slt, %10, %13 : vector<8x16x128xi32>
    %cst_9 = arith.constant 0.000000e+00 : f32
    %15 = vector.broadcast %cst_9 : f32 to vector<8x16x128xf32>
    %16 = arith.select %14, %9, %15 : vector<8x16x128xi1>, vector<8x16x128xf32>
    %cst_10 = arith.constant dense<0xFF800000> : vector<8x128xf32>
    %17 = vector.multi_reduction <maximumf>, %16, %cst_10 [1] : vector<8x16x128xf32> to vector<8x128xf32>
    %c0_11 = arith.constant 0 : index
    %c0_12 = arith.constant 0 : index
    %18 = vector.load %arg5[%c0_11, %c0_12] : memref<128x128xf32, #tpu.memory_space<vmem>>, vector<128x128xf32>
    %cst_13 = arith.constant dense<0.000000e+00> : vector<8x128xf32>
    %19 = tpu.matmul %17, %18, %cst_13 {dimension_numbers = #tpu.dot_dimension_numbers<[1], [0], [0], [1], [0, 0, 1, 1], [], []>} : vector<8x128xf32>, vector<128x128xf32>, vector<8x128xf32> -> vector<8x128xf32>
    %c0_14 = arith.constant 0 : index
    %c0_15 = arith.constant 0 : index
    %20 = vector.load %arg6[%c0_14, %c0_15] : memref<1x128xf32, #tpu.memory_space<vmem>>, vector<1x128xf32>
    %21 = vector.broadcast %20 : vector<1x128xf32> to vector<8x128xf32>
    %22 = arith.addf %19, %21 : vector<8x128xf32>
    %23 = tpu.iota {dimensions = array<i32: 1>} : vector<8x128xi32>
    %c4_i32 = arith.constant 4 : i32
    %24 = vector.broadcast %c4_i32 : i32 to vector<8x128xi32>
    %25 = arith.cmpi slt, %23, %24 : vector<8x128xi32>
    %cst_16 = arith.constant 0xFF800000 : f32
    %26 = vector.broadcast %cst_16 : f32 to vector<8x128xf32>
    %27 = arith.select %25, %22, %26 : vector<8x128xi1>, vector<8x128xf32>
    %cst_17 = arith.constant dense<0xFF800000> : vector<8xf32>
    %28 = vector.multi_reduction <maximumf>, %27, %cst_17 [1] : vector<8x128xf32> to vector<8xf32>
    %29 = vector.shape_cast %28 : vector<8xf32> to vector<8x1xf32>
    %30 = vector.broadcast %29 : vector<8x1xf32> to vector<8x128xf32>
    %31 = arith.subf %22, %30 : vector<8x128xf32>
    %32 = math.exp %31 : vector<8x128xf32>
    %cst_18 = arith.constant 0.000000e+00 : f32
    %33 = vector.broadcast %cst_18 : f32 to vector<8x128xf32>
    %34 = arith.select %25, %32, %33 : vector<8x128xi1>, vector<8x128xf32>
    %cst_19 = arith.constant dense<0.000000e+00> : vector<8xf32>
    %35 = vector.multi_reduction <add>, %34, %cst_19 [1] : vector<8x128xf32> to vector<8xf32>
    %36 = vector.shape_cast %35 : vector<8xf32> to vector<8x1xf32>
    %37 = math.log %36 : vector<8x1xf32>
    %38 = arith.addf %37, %29 : vector<8x1xf32>
    %39 = vector.broadcast %38 : vector<8x1xf32> to vector<8x128xf32>
    %40 = arith.subf %22, %39 : vector<8x128xf32>
    %c0_20 = arith.constant 0 : index
    %c0_21 = arith.constant 0 : index
    %41 = vector.load %arg7[%c0_20, %c0_21] : memref<8x128xf32, #tpu.memory_space<vmem>>, vector<8x128xf32>
    tpu.vector_store %arg7[%c0_20, %c0_21], %40 {strides = array<i32>} : memref<8x128xf32, #tpu.memory_space<vmem>>, vector<8x128xf32>,
    return
  }
  func.func @transform_0(%arg0: i32) -> (i32, i32, i32) {
    %c0_i32 = arith.constant 0 : i32
    %c0_i32_0 = arith.constant 0 : i32
    %c0_i32_1 = arith.constant 0 : i32
    return %arg0, %c0_i32, %c0_i32_0 : i32, i32, i32
  }
  func.func @transform_1(%arg0: i32) -> (i32, i32) {
    %c0_i32 = arith.constant 0 : i32
    %c0_i32_0 = arith.constant 0 : i32
    %c0_i32_1 = arith.constant 0 : i32
    return %c0_i32, %c0_i32_0 : i32, i32
  }
  func.func @transform_2(%arg0: i32) -> (i32, i32) {
    %c0_i32 = arith.constant 0 : i32
    %c0_i32_0 = arith.constant 0 : i32
    %c0_i32_1 = arith.constant 0 : i32
    return %c0_i32, %c0_i32_0 : i32, i32
  }
  func.func @transform_3(%arg0: i32) -> (i32, i32) {
    %c0_i32 = arith.constant 0 : i32
    %c0_i32_0 = arith.constant 0 : i32
    %c0_i32_1 = arith.constant 0 : i32
    return %c0_i32, %c0_i32_0 : i32, i32
  }
  func.func @transform_4(%arg0: i32) -> (i32, i32) {
    %c0_i32 = arith.constant 0 : i32
    %c0_i32_0 = arith.constant 0 : i32
    %c0_i32_1 = arith.constant 0 : i32
    return %c0_i32, %c0_i32_0 : i32, i32
  }
  func.func @transform_5(%arg0: i32) -> (i32, i32) {
    %c0_i32 = arith.constant 0 : i32
    %c0_i32_0 = arith.constant 0 : i32
    %c0_i32_1 = arith.constant 0 : i32
    return %c0_i32, %c0_i32_0 : i32, i32
  }
  func.func @transform_6(%arg0: i32) -> (i32, i32) {
    %c0_i32 = arith.constant 0 : i32
    %c0_i32_0 = arith.constant 0 : i32
    return %arg0, %c0_i32 : i32, i32
  }
}

</mosaic_0001>

<bundles_post_ra>
// kernel: tpu_custom_call.1
= control target key start
LH: loop header
LB: loop body
LE: loop exit
PB: predicated region body
PF: predicated region fallthrough
CT: control target
= control target key end

     0   :  { %11 = vsyncpa [#allocation3], 0  ;;  %s810_s0 = inlined_call_operand.hbm [shape: f32[8,16,160], index: 0, kind: input, shape index: {}]   ;;  %s811_s1 = inlined_call_operand.hbm [shape: f32[160,128], index: 1, kind: input, shape index: {}]   ;;  %s812_s2 = inlined_call_operand.vmem [shape: f32[1,128], index: 2, kind: input, shape index: {}]   ;;  %s813_s3 = inlined_call_operand.vmem [shape: s32[1,128], index: 3, kind: input, shape index: {}]   ;;  %s814_s4 = inlined_call_operand.hbm [shape: f32[128,128], index: 4, kind: input, shape index: {}]   ;;  %s815_s5 = inlined_call_operand.vmem [shape: f32[1,128], index: 5, kind: input, shape index: {}]   ;;  %s816_s6 = inlined_call_operand.hbm [shape: f32[8,128], index: 6, kind: output, shape index: {}]  }
   0x1   :  { %12 = vsyncpa [#allocation6], 0  ;;  %s31_s23 = sshll.u32 %s811_s1, 4  ;;  %s32_s23 = int_to_ptr.hbm [resolvable:$true] %s31_s23 }
   0x2   :  { %13 = vsyncpa [#allocation4], 0  ;;  %s652_s24 = smov [#allocation5]   ;;  %s18_s28 = sshll.u32 %s810_s0, 4  ;;  %s19_s28 = int_to_ptr.hbm [resolvable:$true] %s18_s28 }
   0x3   :  { %s33_s25 = sshll.u32 %s652_s24, 4  ;;  %s653_s29 = smov 128   ;;  %s34_s25 = int_to_ptr.vmem [resolvable:$true] %s33_s25 }
   0x4   :  { %s654_s30 = smov 8   ;;  %s655_s7 = smov [#allocation2]  }
   0x5   :  { %39 = dma.hbm_to_vmem [thread:$0]  %s32_s23, 2560, %s34_s25, [#allocation6], %s653_s29, %s653_s29, %s654_s30  }
   0x6   :  { %s20_s8 = sshll.u32 %s655_s7, 4  ;;  %s656_s9 = smov 256   ;;  %s21_s8 = int_to_ptr.vmem [resolvable:$true] %s20_s8 }
   0x7   :  { %s657_s10 = smov 16   ;;  %s48_s12 = sshll.u32 %s814_s4, 4  ;;  %s49_s12 = int_to_ptr.hbm [resolvable:$true] %s48_s12 }
   0x8   :  { %26 = dma.hbm_to_vmem [thread:$0]  %s19_s28, 4096, %s21_s8, [#allocation3], %s656_s9, %s656_s9, %s657_s10  }
   0x9   :  { %s658_s13 = smov [#allocation7]  }
   0xa   :  { %s50_s14 = sshll.u32 %s658_s13, 4  ;;  %s51_s14 = int_to_ptr.vmem [resolvable:$true] %s50_s14 }
   0xb   :  { %56 = dma.hbm_to_vmem [thread:$0]  %s49_s12, 2048, %s51_s14, [#allocation6], %s653_s29, %s653_s29, %s654_s30  }
   0xc   :  { %646 = dma.done.wait [#allocation3], 4096  }
   0xd   :  { %647 = vsyncadd [#allocation3], 4294963200 }
   0xe   :  { %648 = dma.done.wait [#allocation6], 4608  }
   0xf   :  { %649 = vsyncadd [#allocation6], 4294962688  ;;  %v118_v0 = vld [vmem:[#allocation5 + $0x78] sm:$0xff]  ;;  %v117_v2 = vld [vmem:[#allocation5 + $0x70] sm:$0xff]  ;;  %vm127_vm0 = vcmask 261120   ;;  %vm429_vm3 = vcmask 1041409  }
  0x10   :  { %v122_v1 = vld [vmem:[#allocation5 + $0x98] sm:$0xff]  ;;  %176 = vmatpush.msra.mxu0 %v118_v0  ;;  %515 = vmatpush.msra.mxu3 %v118_v0  ;;  %v121_v3 = vld [vmem:[#allocation5 + $0x90] sm:$0xff]  ;;  %v116_v4 = vld [vmem:[#allocation5 + $0x68] sm:$0xff]  ;;  %vm431_vm4 = vcmask 1042434   ;;  %vm433_vm5 = vcmask 1043459   ;;  %vm435_vm6 = vcmask 1044484  }
  0x11   :  { %253 = vmatpush.msra.mxu1 %v122_v1  ;;  %531 = vmatpush.msra.mxu2 %v122_v1  ;;  %v120_v5 = vld [vmem:[#allocation5 + $0x88] sm:$0xff]  ;;  %v115_v6 = vld [vmem:[#allocation5 + $0x60] sm:$0xff]  ;;  %v114_v9 = vld [vmem:[#allocation5 + $0x58] sm:$0xff]  ;;  %vm437_vm7 = vcmask 1045509   ;;  %vm439_vm8 = vcmask 1046534   ;;  %vm441_vm9 = vcmask 1047559  }
  0x12   :  { %177 = vmatpush.msra.mxu0 %v117_v2  ;;  %516 = vmatpush.msra.mxu3 %v117_v2  ;;  %v119_v7 = vld [vmem:[#allocation5 + $0x80] sm:$0xff]  ;;  %v72_v8 = vld [vmem:[#allocation2 + $0x8] sm:$0xff]  ;;  %v113_v10 = vld [vmem:[#allocation5 + $0x50] sm:$0xff]  ;;  %s659_s17 = smov [#allocation8]   ;;  %s488_s20 = sshll.u32 %s816_s6, 4  ;;  %s489_s20 = int_to_ptr.hbm [resolvable:$true] %s488_s20 }
  0x13   :  { %254 = vmatpush.msra.mxu1 %v121_v3  ;;  %532 = vmatpush.msra.mxu2 %v121_v3  ;;  %v112_v11 = vld [vmem:[#allocation5 + $0x48] sm:$0xff]  ;;  %v111_v12 = vld [vmem:[#allocation5 + $0x40] sm:$0xff]  ;;  %v74_v13 = vld [vmem:[#allocation2 + $0x18] sm:$0xff]  ;;  %s486_s18 = sshll.u32 %s659_s17, 4  ;;  %s487_s18 = int_to_ptr.vmem [resolvable:$true] %s486_s18 }
  0x14   :  { %178 = vmatpush.msra.mxu0 %v116_v4  ;;  %517 = vmatpush.msra.mxu3 %v116_v4  ;;  %v110_v14 = vld [vmem:[#allocation5 + $0x38] sm:$0xff]  ;;  %v109_v15 = vld [vmem:[#allocation5 + $0x30] sm:$0xff]  ;;  %v92_v16 = vld [vmem:[#allocation2 + $0xa8] sm:$0xff] }
  0x15   :  { %255 = vmatpush.msra.mxu1 %v120_v5  ;;  %533 = vmatpush.msra.mxu2 %v120_v5  ;;  %v108_v17 = vld [vmem:[#allocation5 + $0x28] sm:$0xff]  ;;  %v107_v18 = vld [vmem:[#allocation5 + $0x20] sm:$0xff]  ;;  %v106_v20 = vld [vmem:[#allocation5 + $0x18] sm:$0xff] }
  0x16   :  { %179 = vmatpush.msra.mxu0 %v115_v6  ;;  %518 = vmatpush.msra.mxu3 %v115_v6  ;;  %v76_v19 = vld [vmem:[#allocation2 + $0x28] sm:$0xff]  ;;  %v105_v21 = vld [vmem:[#allocation5 + $0x10] sm:$0xff]  ;;  %v94_v22 = vld [vmem:[#allocation2 + $0xb8] sm:$0xff] }
  0x17   :  { %256 = vmatpush.msra.mxu1 %v119_v7  ;;  %534 = vmatpush.msra.mxu2 %v119_v7  ;;  %v104_v23 = vld [vmem:[#allocation5 + $0x8] sm:$0xff]  ;;  %v103_v24 = vld [vmem:[#allocation5] sm:$0xff]  ;;  %v78_v27 = vld [vmem:[#allocation2 + $0x38] sm:$0xff] }
  0x18   :  { %499 = vmatmul.msk.f32.vlgmr.msra.gmra.mxu1 %vm127_vm0, %v72_v8  ;;  %180 = vmatpush.msra.mxu0 %v114_v9  ;;  %v71_v25 = vld [vmem:[#allocation2] sm:$0xff]  ;;  %v96_v28 = vld [vmem:[#allocation2 + $0xc8] sm:$0xff]  ;;  %v73_v29 = vld [vmem:[#allocation2 + $0x10] sm:$0xff] }
  0x19   :  { %519 = vmatpush.msra.mxu3 %v114_v9  ;;  %509 = vmatmul.msk.f32.vlgmr.msra.gmra.mxu2 %vm127_vm0, %v92_v16  ;;  %v87_v26 = vld [vmem:[#allocation2 + $0x80] sm:$0xff]  ;;  %v89_v30 = vld [vmem:[#allocation2 + $0x90] sm:$0xff]  ;;  %v80_v31 = vld [vmem:[#allocation2 + $0x48] sm:$0xff] }
  0x1a   :  { %181 = vmatpush.msra.mxu0 %v113_v10  ;;  %v98_v32 = vld [vmem:[#allocation2 + $0xd8] sm:$0xff]  ;;  %v75_v33 = vld [vmem:[#allocation2 + $0x20] sm:$0xff]  ;;  %v100_v36 = vld [vmem:[#allocation2 + $0xe8] sm:$0xff] }
  0x1b   :  { %520 = vmatpush.msra.mxu3 %v113_v10  ;;  %v91_v34 = vld [vmem:[#allocation2 + $0xa0] sm:$0xff]  ;;  %v82_v35 = vld [vmem:[#allocation2 + $0x58] sm:$0xff]  ;;  %v77_v37 = vld [vmem:[#allocation2 + $0x30] sm:$0xff]  ;;  %v322_v10 = vlaneseq }
  0x1c   :  { %182 = vmatpush.msra.mxu0 %v112_v11  ;;  %v93_v38 = vld [vmem:[#allocation2 + $0xb0] sm:$0xff]  ;;  %v84_v39 = vld [vmem:[#allocation2 + $0x68] sm:$0xff]  ;;  %v102_v40 = vld [vmem:[#allocation2 + $0xf8] sm:$0xff] }
  0x1d   :  { %521 = vmatpush.msra.mxu3 %v112_v11  ;;  %v79_v41 = vld [vmem:[#allocation2 + $0x40] sm:$0xff]  ;;  %v86_v43 = vld [vmem:[#allocation2 + $0x78] sm:$0xff]  ;;  %v81_v44 = vld [vmem:[#allocation2 + $0x50] sm:$0xff] }
  0x1e   :  { %183 = vmatpush.msra.mxu0 %v111_v12  ;;  %v95_v42 = vld [vmem:[#allocation2 + $0xc0] sm:$0xff]  ;;  %v97_v45 = vld [vmem:[#allocation2 + $0xd0] sm:$0xff]  ;;  %v88_v46 = vld [vmem:[#allocation2 + $0x88] sm:$0xff] }
  0x1f   :  { %522 = vmatpush.msra.mxu3 %v111_v12  ;;  %v83_v47 = vld [vmem:[#allocation2 + $0x60] sm:$0xff]  ;;  %v90_v49 = vld [vmem:[#allocation2 + $0x98] sm:$0xff]  ;;  %v85_v50 = vld [vmem:[#allocation2 + $0x70] sm:$0xff] }
  0x20   :  { %500 = vmatmul.msk.f32.gmra.mxu1 %vm127_vm0, %v74_v13  ;;  %184 = vmatpush.msra.mxu0 %v110_v14  ;;  %v99_v48 = vld [vmem:[#allocation2 + $0xe0] sm:$0xff]  ;;  %v101_v51 = vld [vmem:[#allocation2 + $0xf0] sm:$0xff]  ;;  %v416_v0 = vld [vmem:[#allocation7 + $0x78] sm:$0xff] }
  0x21   :  { %523 = vmatpush.msra.mxu3 %v110_v14  ;;  %510 = vmatmul.msk.f32.gmra.mxu2 %vm127_vm0, %v94_v22  ;;  %v415_v4 = vld [vmem:[#allocation7 + $0x70] sm:$0xff]  ;;  %v414_v6 = vld [vmem:[#allocation7 + $0x68] sm:$0xff]  ;;  %v413_v7 = vld [vmem:[#allocation7 + $0x60] sm:$0xff] }
  0x22   :  { %185 = vmatpush.msra.mxu0 %v109_v15  ;;  %444 = vmatpush.msrb.mxu2 %v416_v0  ;;  %v731_v8 = vld [vmem:[%s812_s2] ss:$0 sm:$0xff]  ;;  %v412_v9 = vld [vmem:[#allocation7 + $0x58] sm:$0xff]  ;;  %v411_v14 = vld [vmem:[#allocation7 + $0x50] sm:$0xff] }
  0x23   :  { %524 = vmatpush.msra.mxu3 %v109_v15 }
  0x24   :  { %186 = vmatpush.msra.mxu0 %v108_v17  ;;  %445 = vmatpush.msrb.mxu2 %v415_v4 }
  0x25   :  { %525 = vmatpush.msra.mxu3 %v108_v17 }
  0x26   :  { %187 = vmatpush.msra.mxu0 %v107_v18  ;;  %446 = vmatpush.msrb.mxu2 %v414_v6 }
  0x27   :  { %526 = vmatpush.msra.mxu3 %v107_v18 }
  0x28   :  { %501 = vmatmul.msk.f32.gmra.mxu1 %vm127_vm0, %v76_v19  ;;  %188 = vmatpush.msra.mxu0 %v106_v20  ;;  %v410_v19 = vld [vmem:[#allocation7 + $0x48] sm:$0xff] }
  0x29   :  { %527 = vmatpush.msra.mxu3 %v106_v20  ;;  %511 = vmatmul.msk.f32.gmra.mxu2 %vm127_vm0, %v96_v28  ;;  %v323_v20 = vshrl.u32 %v322_v10, 7  ;;  %v408_v28 = vld [vmem:[#allocation7 + $0x38] sm:$0xff] }
  0x2a   :  { %189 = vmatpush.msra.mxu0 %v105_v21  ;;  %447 = vmatpush.msrb.mxu2 %v413_v7 }
  0x2b   :  { %528 = vmatpush.msra.mxu3 %v105_v21 }
  0x2c   :  { %190 = vmatpush.msra.mxu0 %v104_v23  ;;  %448 = vmatpush.msrb.mxu2 %v412_v9 }
  0x2d   :  { %529 = vmatpush.msra.mxu3 %v104_v23 }
  0x2e   :  { %191 = vmatpush.msra.mxu0 %v103_v24  ;;  %449 = vmatpush.msrb.mxu2 %v411_v14 }
  0x2f   :  { %530 = vmatpush.msra.mxu3 %v103_v24  ;;  %192 = vmatmul.f32.vlgmr.msra.gmra.mxu0 %v71_v25  ;;  %v409_v24 = vld [vmem:[#allocation7 + $0x40] sm:$0xff]  ;;  %v324_v25 = vadd.s32 8, %v323_v20 }
  0x30   :  { %216 = vmatmul.f32.vlgmr.msra.gmra.mxu3 %v87_v26  ;;  %502 = vmatmul.msk.f32.gmra.mxu1 %vm127_vm0, %v78_v27 }
  0x31   :  { %512 = vmatmul.msk.f32.gmra.mxu2 %vm127_vm0, %v98_v32 }
  0x32   :  { %450 = vmatpush.msrb.mxu2 %v410_v19 }
  0x34   :  { %451 = vmatpush.msrb.mxu2 %v409_v24 }
  0x36   :  { %452 = vmatpush.msrb.mxu2 %v408_v28 }
  0x37   :  { %195 = vmatmul.f32.gmra.mxu0 %v73_v29  ;;  %v544_v29 = vld [vmem:[%s813_s3] ss:$0 sm:$0xff] }
  0x38   :  { %219 = vmatmul.f32.gmra.mxu3 %v89_v30  ;;  %503 = vmatmul.msk.f32.gmra.mxu1 %vm127_vm0, %v80_v31  ;;  %vm747_vm1 = vcmp.lt.s32.totalorder %v324_v25, %v544_v29  ;;  %vm753_vm2 = vcmp.lt.s32.totalorder %v323_v20, %v544_v29  ;;  %v401_v20 = vld [vmem:[#allocation7] sm:$0xff] }
  0x39   :  { %513 = vmatmul.msk.f32.gmra.mxu2 %vm127_vm0, %v100_v36  ;;  %v407_v36 = vld [vmem:[#allocation7 + $0x30] sm:$0xff] }
  0x3a   :  { %453 = vmatpush.msrb.mxu2 %v407_v36 }
  0x3f   :  { %198 = vmatmul.f32.gmra.mxu0 %v75_v33 }
  0x40   :  { %222 = vmatmul.f32.gmra.mxu3 %v91_v34  ;;  %504 = vmatmul.msk.f32.gmra.mxu1 %vm127_vm0, %v82_v35 }
  0x41   :  { %514 = vmatmul.msk.f32.gmra.mxu2 %vm127_vm0, %v102_v40 }
  0x47   :  { %201 = vmatmul.f32.gmra.mxu0 %v77_v37 }
  0x48   :  { %225 = vmatmul.f32.gmra.mxu3 %v93_v38  ;;  %505 = vmatmul.msk.f32.gmra.mxu1 %vm127_vm0, %v84_v39 }
  0x4f   :  { %204 = vmatmul.f32.gmra.mxu0 %v79_v41 }
  0x50   :  { %228 = vmatmul.f32.gmra.mxu3 %v95_v42  ;;  %506 = vmatmul.msk.f32.gmra.mxu1 %vm127_vm0, %v86_v43  ;;  %v406_v43 = vld [vmem:[#allocation7 + $0x28] sm:$0xff] }
  0x51   :  { %454 = vmatpush.msrb.mxu2 %v406_v43 }
  0x57   :  { %207 = vmatmul.f32.gmra.mxu0 %v81_v44 }
  0x58   :  { %231 = vmatmul.f32.gmra.mxu3 %v97_v45  ;;  %507 = vmatmul.msk.f32.gmra.mxu1 %vm127_vm0, %v88_v46 }
  0x5f   :  { %210 = vmatmul.f32.gmra.mxu0 %v83_v47 }
  0x60   :  { %234 = vmatmul.f32.gmra.mxu3 %v99_v48  ;;  %508 = vmatmul.msk.f32.gmra.mxu1 %vm127_vm0, %v90_v49 }
  0x67   :  { %213 = vmatmul.f32.gmra.mxu0 %v85_v50 }
  0x68   :  { %237 = vmatmul.f32.gmra.mxu3 %v101_v51 }
  0x95   :  { %v258_v52 = vpop.f32.mrf.mxu1 }
  0x9c   :  { %v722_v60 = vpop.f32.mrf.mxu2 }
  0x9d   :  { %v261_v53 = vpop.f32.mrf.mxu1 }
  0xa4   :  { %v291_v2 = vpop.f32.mrf.mxu2 }
  0xa5   :  { %v264_v54 = vpop.f32.mrf.mxu1 }
  0xac   :  { %v193_v55 = vpop.f32.mrf.mxu0  ;;  %v737_v17 = vpop.f32.mrf.mxu2 }
  0xad   :  { %v267_v56 = vpop.f32.mrf.mxu1  ;;  %v194_v18 = vadd.f32 %v731_v8, %v193_v55 }
  0xaf   :  { %v259_v27 = vadd.f32 %v258_v52, %v194_v18  ;;  %v405_v52 = vld [vmem:[#allocation7 + $0x20] sm:$0xff] }
  0xb0   :  { %455 = vmatpush.msrb.mxu2 %v405_v52 }
  0xb1   :  { %v306_v41 = vmax.f32 %v259_v27, 0.0 }
  0xb3   :  { %v720_v57 = vpop.f32.mrf.mxu3 }
  0xb4   :  { %v196_v58 = vpop.f32.mrf.mxu0  ;;  %v297_v47 = vpop.f32.mrf.mxu2  ;;  %v218_v48 = vadd.f32 %v731_v8, %v720_v57  ;;  %v404_v57 = vld [vmem:[#allocation7 + $0x18] sm:$0xff] }
  0xb5   :  { %v270_v59 = vpop.f32.mrf.mxu1  ;;  %v197_v12 = vadd.f32 %v731_v8, %v196_v58  ;;  %456 = vmatpush.msrb.mxu2 %v404_v57 }
  0xb7   :  { %v262_v22 = vadd.f32 %v261_v53, %v197_v12 }
  0xb9   :  { %v307_v32 = vmax.f32 %v262_v22, 0.0 }
  0xbb   :  { %v724_v61 = vpop.f32.mrf.mxu3  ;;  %v330_v49 = vsel %vm747_vm1, %v307_v32, 0.0 }
  0xbc   :  { %v199_v62 = vpop.f32.mrf.mxu0 }
  0xbd   :  { %v273_v63 = vpop.f32.mrf.mxu1  ;;  %v200_v21 = vadd.f32 %v731_v8, %v199_v62 }
  0xbf   :  { %v265_v30 = vadd.f32 %v264_v54, %v200_v21 }
  0xc1   :  { %v308_v45 = vmax.f32 %v265_v30, 0.0 }
  0xc3   :  { %v223_v1 = vpop.f32.mrf.mxu3  ;;  %v331_v0 = vsel %vm753_vm2, %v308_v45, 0.0 }
  0xc4   :  { %v202_v3 = vpop.f32.mrf.mxu0  ;;  %v224_v42 = vadd.f32 %v731_v8, %v223_v1 }
  0xc5   :  { %v726_v5 = vpop.f32.mrf.mxu1  ;;  %v203_v15 = vadd.f32 %v731_v8, %v202_v3  ;;  %v403_v3 = vld [vmem:[#allocation7 + $0x10] sm:$0xff] }
  0xc6   :  { %v289_v58 = vadd.f32 %v722_v60, %v224_v42  ;;  %457 = vmatpush.msrb.mxu2 %v403_v3 }
  0xc7   :  { %v268_v26 = vadd.f32 %v267_v56, %v203_v15  ;;  %v329_v56 = vsel %vm753_vm2, %v306_v41, 0.0 }
  0xc8   :  { %v345_v62 = vmax.f32 %v329_v56, %v330_v49  ;;  %v316_v14 = vmax.f32 %v289_v58, 0.0 }
  0xc9   :  { %v309_v38 = vmax.f32 %v268_v26, 0.0 }
  0xca   :  { %v346_v21 = vrot.slane %v345_v62, 4  ;;  %v339_v29 = vsel %vm753_vm2, %v316_v14, 0.0 }
  0xcb   :  { %v226_v11 = vpop.f32.mrf.mxu3  ;;  %v332_v53 = vsel %vm747_vm1, %v309_v38, 0.0 }
  0xcc   :  { %v205_v13 = vpop.f32.mrf.mxu0  ;;  %v227_v33 = vadd.f32 %v731_v8, %v226_v11  ;;  %v352_v4 = vmax.f32 %v331_v0, %v332_v53  ;;  %v402_v11 = vld [vmem:[#allocation7 + $0x8] sm:$0xff]  ;;  %v347_v38 = vmax.f32 %v345_v62, %v346_v21 }
  0xcd   :  { %v735_v16 = vpop.f32.mrf.mxu1  ;;  %v206_v23 = vadd.f32 %v731_v8, %v205_v13  ;;  %458 = vmatpush.msrb.mxu2 %v402_v11 }
  0xce   :  { %v292_v51 = vadd.f32 %v291_v2, %v227_v33 }
  0xcf   :  { %v271_v34 = vadd.f32 %v270_v59, %v206_v23  ;;  %v353_v23 = vrot.slane %v352_v4, 4  ;;  %459 = vmatpush.msrb.mxu2 %v401_v20 }
  0xd0   :  { %v317_v60 = vmax.f32 %v292_v51, 0.0  ;;  %v348_v51 = vrot.slane %v347_v38, 2 }
  0xd1   :  { %v310_v50 = vmax.f32 %v271_v34, 0.0 }
  0xd2   :  { %v340_v24 = vsel %vm747_vm1, %v317_v60, 0.0 }
  0xd3   :  { %v229_v31 = vpop.f32.mrf.mxu3  ;;  %v333_v6 = vsel %vm753_vm2, %v310_v50, 0.0  ;;  %v380_v32 = vmax.f32 %v339_v29, %v340_v24 }
  0xd4   :  { %v208_v35 = vpop.f32.mrf.mxu0  ;;  %v230_v54 = vadd.f32 %v731_v8, %v229_v31 }
  0xd5   :  { %v209_v39 = vadd.f32 %v731_v8, %v208_v35  ;;  %v282_v40 = vpop.f32.mrf.mxu1 }
  0xd6   :  { %v283_v59 = vadd.f32 %v282_v40, %v218_v48  ;;  %v381_v48 = vrot.slane %v380_v32, 4 }
  0xd7   :  { %v274_v46 = vadd.f32 %v273_v63, %v209_v39  ;;  %v221_v63 = vadd.f32 %v731_v8, %v724_v61  ;;  %v295_v61 = vadd.f32 %v737_v17, %v230_v54  ;;  %v300_v17 = vpop.f32.mrf.mxu2  ;;  %v354_v39 = vmax.f32 %v352_v4, %v353_v23 }
  0xd8   :  { %v314_v15 = vmax.f32 %v283_v59, 0.0  ;;  %v382_v58 = vmax.f32 %v380_v32, %v381_v48 }
  0xd9   :  { %v311_v55 = vmax.f32 %v274_v46, 0.0  ;;  %v318_v28 = vmax.f32 %v295_v61, 0.0  ;;  %v355_v50 = vrot.slane %v354_v39, 2 }
  0xda   :  { %v337_v30 = vsel %vm753_vm2, %v314_v15, 0.0  ;;  %v383_v11 = vrot.slane %v382_v58, 2 }
  0xdb   :  { %v334_v1 = vsel %vm747_vm1, %v311_v55, 0.0  ;;  %v232_v2 = vpop.f32.mrf.mxu3  ;;  %v341_v42 = vsel %vm753_vm2, %v318_v28, 0.0  ;;  %v356_v0 = vmax.f32 %v354_v39, %v355_v50 }
  0xdc   :  { %v233_v7 = vadd.f32 %v731_v8, %v232_v2  ;;  %v211_v9 = vpop.f32.mrf.mxu0  ;;  %v359_v12 = vmax.f32 %v333_v6, %v334_v1  ;;  %v349_v2 = vmax.f32 %v347_v38, %v348_v51 }
  0xdd   :  { %v285_v13 = vpop.f32.mrf.mxu1  ;;  %v212_v22 = vadd.f32 %v731_v8, %v211_v9 }
  0xde   :  { %v286_v18 = vadd.f32 %v285_v13, %v221_v63  ;;  %v298_v19 = vadd.f32 %v297_v47, %v233_v7  ;;  %v360_v27 = vrot.slane %v359_v12, 4  ;;  %v350_v14 = vrot.slane %v349_v2, 1 }
  0xdf   :  { %v277_v33 = vadd.f32 %v726_v5, %v212_v22  ;;  %v303_v63 = vpop.f32.mrf.mxu2  ;;  %v384_v22 = vmax.f32 %v382_v58, %v383_v11 }
  0xe0   :  { %v315_v25 = vmax.f32 %v286_v18, 0.0  ;;  %v319_v26 = vmax.f32 %v298_v19, 0.0  ;;  %v361_v41 = vmax.f32 %v359_v12, %v360_v27  ;;  %v357_v12 = vrot.slane %v356_v0, 1 }
  0xe1   :  { %v312_v5 = vmax.f32 %v277_v33, 0.0 }
  0xe2   :  { %v338_v31 = vsel %vm747_vm1, %v315_v25, 0.0  ;;  %v342_v35 = vsel %vm747_vm1, %v319_v26, 0.0  ;;  %v362_v52 = vrot.slane %v361_v41, 2  ;;  %v358_v24 = vmax.f32 %v356_v0, %v357_v12 }
  0xe3   :  { %v373_v34 = vmax.f32 %v337_v30, %v338_v31  ;;  %v235_v36 = vpop.f32.mrf.mxu3  ;;  %v387_v46 = vmax.f32 %v341_v42, %v342_v35  ;;  %v335_v59 = vsel %vm753_vm2, %v312_v5, 0.0  ;;  %v385_v31 = vrot.slane %v384_v22, 1 }
  0xe4   :  { %v214_v40 = vpop.f32.mrf.mxu0  ;;  %v236_v47 = vadd.f32 %v731_v8, %v235_v36  ;;  %v363_v3 = vmax.f32 %v361_v41, %v362_v52  ;;  %v465_v5 = vand.u32 127, %v322_v10 }
  0xe5   :  { %v374_v43 = vrot.slane %v373_v34, 4  ;;  %v215_v45 = vadd.f32 %v731_v8, %v214_v40  ;;  %v388_v55 = vrot.slane %v387_v46, 4  ;;  %v386_v39 = vmax.f32 %v384_v22, %v385_v31 }
  0xe6   :  { %v301_v56 = vadd.f32 %v300_v17, %v236_v47  ;;  %v364_v15 = vrot.slane %v363_v3, 1  ;;  %v351_v17 = vmax.f32 %v349_v2, %v350_v14  ;;  %vm466_vm10 = vcmp.lt.s32.totalorder %v465_v5, 4 }
  0xe7   :  { %v280_v49 = vadd.f32 %v735_v16, %v215_v45  ;;  %v375_v53 = vmax.f32 %v373_v34, %v374_v43  ;;  %v389_v6 = vmax.f32 %v387_v46, %v388_v55 }
  0xe8   :  { %v320_v7 = vmax.f32 %v301_v56, 0.0  ;;  %v365_v26 = vmax.f32 %v363_v3, %v364_v15  ;;  %v430_v33 = vsel %vm429_vm3, %v358_v24, %v351_v17 }
  0xe9   :  { %v313_v54 = vmax.f32 %v280_v49, 0.0  ;;  %v376_v4 = vrot.slane %v375_v53, 2  ;;  %v390_v19 = vrot.slane %v389_v6, 2  ;;  %v545_v49 = vld [vmem:[%s815_s5] ss:$0 sm:$0xff] }
  0xea   :  { %v343_v21 = vsel %vm753_vm2, %v320_v7, 0.0  ;;  %v432_v35 = vsel %vm431_vm4, %v365_v26, %v430_v33 }
  0xeb   :  { %v336_v57 = vsel %vm747_vm1, %v313_v54, 0.0  ;;  %v238_v62 = vpop.f32.mrf.mxu3  ;;  %v377_v18 = vmax.f32 %v375_v53, %v376_v4  ;;  %v391_v29 = vmax.f32 %v389_v6, %v390_v19 }
  0xec   :  { %v366_v1 = vmax.f32 %v335_v59, %v336_v57  ;;  %v239_v16 = vadd.f32 %v731_v8, %v238_v62 }
  0xed   :  { %v378_v27 = vrot.slane %v377_v18, 1  ;;  %v392_v36 = vrot.slane %v391_v29, 1 }
  0xee   :  { %v367_v60 = vrot.slane %v366_v1, 4  ;;  %v304_v9 = vadd.f32 %v303_v63, %v239_v16 }
  0xef   :  { %v379_v37 = vmax.f32 %v377_v18, %v378_v27  ;;  %v393_v45 = vmax.f32 %v391_v29, %v392_v36 }
  0xf0   :  { %v368_v61 = vmax.f32 %v366_v1, %v367_v60  ;;  %v321_v13 = vmax.f32 %v304_v9, 0.0 }
  0xf2   :  { %v369_v20 = vrot.slane %v368_v61, 2  ;;  %v344_v8 = vsel %vm747_vm1, %v321_v13, 0.0 }
  0xf3   :  { %v394_v23 = vmax.f32 %v343_v21, %v344_v8 }
  0xf4   :  { %v370_v25 = vmax.f32 %v368_v61, %v369_v20 }
  0xf5   :  { %v395_v28 = vrot.slane %v394_v23, 4 }
  0xf6   :  { %v371_v30 = vrot.slane %v370_v25, 1 }
  0xf7   :  { %v396_v32 = vmax.f32 %v394_v23, %v395_v28 }
  0xf8   :  { %v372_v44 = vmax.f32 %v370_v25, %v371_v30 }
  0xf9   :  { %v397_v34 = vrot.slane %v396_v32, 2 }
  0xfa   :  { %v434_v38 = vsel %vm433_vm5, %v372_v44, %v432_v35 }
  0xfb   :  { %v398_v40 = vmax.f32 %v396_v32, %v397_v34  ;;  %v436_v41 = vsel %vm435_vm6, %v379_v37, %v434_v38 }
  0xfc   :  { %v438_v43 = vsel %vm437_vm7, %v386_v39, %v436_v41 }
  0xfd   :  { %v399_v42 = vrot.slane %v398_v40, 1  ;;  %v440_v47 = vsel %vm439_vm8, %v393_v45, %v438_v43 }
  0xff   :  { %v400_v46 = vmax.f32 %v398_v40, %v399_v42 }
 0x101   :  { %v442_v48 = vsel %vm441_vm9, %v400_v46, %v440_v47 }
 0x102   :  { %460 = vmatmul.f32.vlgmr.msrb.gmra.mxu2 %v442_v48 }
 0x185   :  { %v461_v50 = vpop.f32.mrf.mxu2 }
 0x186   :  { %v462_v51 = vadd.f32 %v545_v49, %v461_v50 }
 0x188   :  { %v467_v52 = vsel %vm466_vm10, %v462_v51, -inf }
 0x189   :  { %468 = vmax.xlane.f32.xlu0 %v467_v52 }
 0x1fc   :  { %v469_v53 = vpop.xlane.xlu0 %468 }
 0x1fd   :  { %v470_v54 = vsub.f32 %v462_v51, %v469_v53 }
 0x1ff   :  { %v471_v55 = vmul.f32 1.442695, %v470_v54 }
 0x201   :  { %546 = vpow2.f32 %v471_v55 }
 0x207   :  { %v547_v56 = vpop.eup %546 }
 0x208   :  { %v473_v58 = vsel %vm466_vm10, %v547_v56, 0.0 }
 0x209   :  { %474 = vadd.xlane.f32.xlu0 %v473_v58 }
 0x27c   :  { %v475_v59 = vpop.xlane.xlu0 %474 }
 0x27d   :  { %548 = vlog2.f32 %v475_v59 }
 0x283   :  { %v549_v57 = vpop.eup %548 }
 0x284   :  { %v477_v10 = vmul.f32 0.6931472, %v549_v57 }
 0x286   :  { %v478_v62 = vadd.f32 %v477_v10, %v469_v53 }
 0x288   :  { %v479_v63 = vsub.f32 %v462_v51, %v478_v62 }
 0x28a   :  { %480 = vst [vmem:[#allocation8] sm:$0xff] %v479_v63 }
 0x28b   :  { %491 = dma.vmem_to_hbm [thread:$0]  %s487_s18, 128, %s489_s20, [#allocation4]  }
 0x28c   :  { %650 = dma.done.wait [#allocation4], 128  }
 0x28d   :  { %651 = vsyncadd [#allocation4], 4294967168 }
 0x28e   :  { %496 = vsyncpa [#allocation3], 1 }
 0x28f   :  { %497 = vsyncpa [#allocation6], 1 }
 0x290   :  { %498 = vsyncpa [#allocation4], 1 }

</bundles_post_ra>
